<compile_context>
chip_gen: v6e
topology: v6e:2x2x1
jax: 0.10.0
libtpu: 0.0.40
codegen_flags: <defaults>
</compile_context>

<pallas_src>
import functools
import itertools

import jax
import jax.numpy as jnp
from jax import lax
from jax.experimental import pallas as pl
from jax.experimental.pallas import tpu as pltpu


# Per-dim tap table for the k=4 / s=2 / crop[1:-1] decomposition.
# For a cropped output coordinate of parity P at base index a, with xp the
# once-padded input:
#   parity 0 (even): y[2a]   = xp[a+0]*W[3] + xp[a+1]*W[1]
#   parity 1 (odd):  y[2a+1] = xp[a+1]*W[2] + xp[a+2]*W[0]
_TAPS_1D = (
    ((0, 3), (1, 1)),   # even cropped positions: (pad_offset, kernel_index)
    ((1, 2), (2, 0)),   # odd  cropped positions
)
_N_OFF = 3              # unique 1-D pad offsets {0, 1, 2}
_N_PHASE = 8            # 2^3 output parities


def _unique_taps(xp, d, h, w):
    """xp: (N, Cin, D+2, H+2, W+2) -> (N, 27*Cin, M) using the 27 unique shifts."""
    n, cin = xp.shape[0], xp.shape[1]
    m = d * h * w
    views = []
    for od, oh, ow in itertools.product(range(_N_OFF), repeat=3):
        sl = xp[:, :, od:od + d, oh:oh + h, ow:ow + w]      # (N, Cin, d, h, w)
        views.append(sl.reshape(n, cin, m))
    t = jnp.stack(views, axis=1)                            # (N, 27, Cin, M)
    return t.reshape(n, _N_OFF ** 3 * cin, m)


def _merged_weights(w):
    """w: (Cin, Cout, 4, 4, 4) -> (Cout*8, 27*Cin) merged single-matmul LHS.

    Row index = c*8 + p (channel-major, phase minor, p = Pd*4+Ph*2+Pw).
    Col index = off*Cin + ci with off = od*9 + oh*3 + ow (matches _unique_taps).
    Offsets a phase does not use stay zero.
    """
    cin, cout = w.shape[0], w.shape[1]
    wl = jnp.zeros((cout, _N_PHASE, _N_OFF ** 3, cin), dtype=jnp.float32)
    for p, (pd, ph, pw) in enumerate(itertools.product((0, 1), repeat=3)):
        for (od, kd), (oh, kh), (ow, kw) in itertools.product(
                _TAPS_1D[pd], _TAPS_1D[ph], _TAPS_1D[pw]):
            off = od * 9 + oh * 3 + ow
            wl = wl.at[:, p, off, :].set(jnp.transpose(w[:, :, kd, kh, kw], (1, 0)))
    return wl.reshape(cout * _N_PHASE, _N_OFF ** 3 * cin)


# -----------------------------------------------------------------------------
# Fused Pallas kernel: one merged matmul + InstanceNorm + LeakyReLU.
# -----------------------------------------------------------------------------
def _upconv_in_lrelu_kernel(t_ref, w_ref, o_ref, *, cout, alpha, eps):
    # t_ref: (1, 27*Cin, M) bf16     shared im2col taps for this sample
    # w_ref: (Cout*8, 27*Cin) bf16   merged per-phase weights (zeros at unused taps)
    # o_ref: (1, Cout*8, M) f32      lane-dense output block
    y = jnp.dot(w_ref[...], t_ref[0],
                preferred_element_type=jnp.float32)          # ONE MXU matmul, f32 acc
    m = y.shape[1]
    yr = y.reshape(cout, _N_PHASE, m)                        # channel-major rows

    # InstanceNorm3d (affine=False, biased variance) per (sample, channel) over
    # all 8*M voxels -- two-pass, on the vreg-resident result -- then LeakyReLU.
    inv_n = 1.0 / (_N_PHASE * m)
    s1 = jnp.sum(jnp.sum(yr, axis=2, keepdims=True), axis=1, keepdims=True)
    mean = s1 * inv_n                                        # (Cout, 1, 1)
    ctr = yr - mean
    s2 = jnp.sum(jnp.sum(ctr * ctr, axis=2, keepdims=True), axis=1, keepdims=True)
    z = ctr * lax.rsqrt(s2 * inv_n + eps)
    z = jnp.where(z >= 0.0, z, alpha * z)
    o_ref[0] = z.reshape(cout * _N_PHASE, m)


def upconv_block_forward(x, w, b, *, alpha=0.1, eps=1e-5):
    """UpConvBlock forward.

    x: (N, Cin, D, H, W) float32
    w: (Cin, Cout, 4, 4, 4) ConvTranspose3d weight (PyTorch layout)
    b: (Cout,)              ConvTranspose3d bias (accepted for API parity, but
                            mathematically dead: InstanceNorm subtracts the
                            per-channel mean, so a constant bias cancels exactly)
    returns (N, Cout, 2D, 2H, 2W) float32
    """
    del b  # cancelled exactly by the InstanceNorm mean subtraction
    n, cin, d, h, wdim = x.shape
    cout = w.shape[1]
    m = d * h * wdim
    k = _N_OFF ** 3 * cin

    xp = jnp.pad(x, ((0, 0), (0, 0), (1, 1), (1, 1), (1, 1)))
    taps = _unique_taps(xp, d, h, wdim).astype(jnp.bfloat16)   # (N, 27*Cin, M)
    wl = _merged_weights(w).astype(jnp.bfloat16)               # (Cout*8, 27*Cin)

    out_flat = pl.pallas_call(
        functools.partial(_upconv_in_lrelu_kernel, cout=cout, alpha=alpha, eps=eps),
        out_shape=jax.ShapeDtypeStruct((n, cout * _N_PHASE, m), jnp.float32),
        grid=(n,),
        in_specs=[
            pl.BlockSpec((1, k, m), lambda i: (i, 0, 0)),
            pl.BlockSpec((cout * _N_PHASE, k), lambda i: (0, 0)),
        ],
        out_specs=pl.BlockSpec((1, cout * _N_PHASE, m), lambda i: (i, 0, 0)),
        compiler_params=pltpu.CompilerParams(
            dimension_semantics=("parallel",)),
    )(taps, wl)

    # Re-interleave phases back into the cropped spatial grid:
    # row c*8 + (Pd*4+Ph*2+Pw), column a*H*W + b*W + c  ->  voxel (2a+Pd, 2b+Ph, 2c+Pw)
    out = out_flat.reshape(n, cout, 2, 2, 2, d, h, wdim)
    out = jnp.transpose(out, (0, 1, 5, 2, 6, 3, 7, 4))
    return out.reshape(n, cout, 2 * d, 2 * h, 2 * wdim)


# -----------------------------------------------------------------------------
# Pure-JAX reference (independent formulation, full f32) for correctness check.
# -----------------------------------------------------------------------------
def upconv_block_reference(x, w, b, *, alpha=0.1, eps=1e-5):
    # ConvTranspose3d(k=4, s=2, no pad) == lhs-dilated cross-correlation with
    # the spatially flipped, channel-transposed kernel and padding k-1 = 3.
    kernel = jnp.transpose(jnp.flip(w, (2, 3, 4)), (1, 0, 2, 3, 4))  # (Cout,Cin,4,4,4)
    y = lax.conv_general_dilated(
        x, kernel, window_strides=(1, 1, 1), padding=[(3, 3)] * 3,
        lhs_dilation=(2, 2, 2),
        dimension_numbers=("NCDHW", "OIDHW", "NCDHW"),
        precision=lax.Precision.HIGHEST)
    y = y + b[None, :, None, None, None]
    y = y[:, :, 1:-1, 1:-1, 1:-1]
    mean = jnp.mean(y, axis=(2, 3, 4), keepdims=True)
    var = jnp.var(y, axis=(2, 3, 4), keepdims=True)        # biased, like PyTorch
    z = (y - mean) / jnp.sqrt(var + eps)
    return jnp.where(z >= 0.0, z, alpha * z)


# jit hoisted to module scope (single trace, reused for every call).
_upconv_block_jit = jax.jit(upconv_block_forward)


if __name__ == "__main__":
    key = jax.random.PRNGKey(0)
    kx, kw, kb = jax.random.split(key, 3)

    # Small shapes: batch=2, in_channels=16, out_channels=8, spatial=8^3.
    # Contraction K = 27*Cin = 432, M = 512 (lane-dense output rows = 64, lanes = 512).
    N, CIN, COUT, D, H, W = 2, 16, 8, 8, 8, 8
    x = jax.random.normal(kx, (N, CIN, D, H, W), jnp.float32)
    wt = 0.05 * jax.random.normal(kw, (CIN, COUT, 4, 4, 4), jnp.float32)
    bias = 0.01 * jax.random.normal(kb, (COUT,), jnp.float32)

    out = _upconv_block_jit(x, wt, bias)
    jax.block_until_ready(out)

    assert out.shape == (N, COUT, 2 * D, 2 * H, 2 * W)
    assert bool(jnp.all(jnp.isfinite(out)))

    # Tolerance accounts for bf16 taps/weights vs. the full-f32 reference
    # (outputs are instance-normalized, so O(1) scale).
    ref = upconv_block_reference(x, wt, bias)
    max_err = float(jnp.max(jnp.abs(out - ref)))
    assert max_err < 1e-1, f"max abs err vs reference: {max_err}"

    print("KERNEL_OK")
</pallas_src>

<mosaic_0001>
module attributes {stable_mosaic.version = 11 : i64} {
  func.func @_upconv_in_lrelu_kernel(%arg0: i32, %arg1: memref<1x432x512xbf16, #tpu.memory_space<vmem>>, %arg2: memref<64x432xbf16, #tpu.memory_space<vmem>>, %arg3: memref<1x64x512xf32, #tpu.memory_space<vmem>>) attributes {dimension_semantics = [#tpu.dimension_semantics<parallel>], iteration_bounds = array<i64: 2>, scalar_prefetch = 0 : i64, scratch_operands = 0 : i64, tpu.core_type = #tpu.core_type<tc>, window_params = [{transform_indices = @transform_0, window_bounds = array<i64: 1, 432, 512>}, {pipeline_mode = #tpu.pipeline_mode<synchronous>, transform_indices = @transform_1, window_bounds = array<i64: 64, 432>}, {transform_indices = @transform_2, window_bounds = array<i64: 1, 64, 512>}]} {
    %c0 = arith.constant 0 : index
    %c0_0 = arith.constant 0 : index
    %0 = vector.load %arg2[%c0, %c0_0] : memref<64x432xbf16, #tpu.memory_space<vmem>>, vector<64x432xbf16>
    %c0_1 = arith.constant 0 : index
    %c0_2 = arith.constant 0 : index
    %c0_3 = arith.constant 0 : index
    %1 = vector.load %arg1[%c0_1, %c0_2, %c0_3] : memref<1x432x512xbf16, #tpu.memory_space<vmem>>, vector<1x432x512xbf16>
    %2 = vector.shape_cast %1 : vector<1x432x512xbf16> to vector<432x512xbf16>
    %cst = arith.constant dense<0.000000e+00> : vector<64x512xf32>
    %3 = tpu.matmul %0, %2, %cst {dimension_numbers = #tpu.dot_dimension_numbers<[1], [0], [0], [1], [0, 0, 1, 1], [], []>} : vector<64x432xbf16>, vector<432x512xbf16>, vector<64x512xf32> -> vector<64x512xf32>
    %4 = vector.shape_cast %3 : vector<64x512xf32> to vector<8x8x512xf32>
    %cst_4 = arith.constant dense<0.000000e+00> : vector<8x8xf32>
    %5 = vector.multi_reduction <add>, %4, %cst_4 [2] : vector<8x8x512xf32> to vector<8x8xf32>
    %6 = vector.shape_cast %5 : vector<8x8xf32> to vector<8x8x1xf32>
    %cst_5 = arith.constant dense<0.000000e+00> : vector<8x1xf32>
    %7 = vector.multi_reduction <add>, %6, %cst_5 [1] : vector<8x8x1xf32> to vector<8x1xf32>
    %8 = vector.shape_cast %7 : vector<8x1xf32> to vector<8x1x1xf32>
    %cst_6 = arith.constant 2.44140625E-4 : f32
    %9 = vector.broadcast %cst_6 : f32 to vector<8x1x1xf32>
    %10 = arith.mulf %8, %9 : vector<8x1x1xf32>
    %11 = vector.broadcast %10 : vector<8x1x1xf32> to vector<8x8x512xf32>
    %12 = arith.subf %4, %11 : vector<8x8x512xf32>
    %13 = arith.mulf %12, %12 : vector<8x8x512xf32>
    %cst_7 = arith.constant dense<0.000000e+00> : vector<8x8xf32>
    %14 = vector.multi_reduction <add>, %13, %cst_7 [2] : vector<8x8x512xf32> to vector<8x8xf32>
    %15 = vector.shape_cast %14 : vector<8x8xf32> to vector<8x8x1xf32>
    %cst_8 = arith.constant dense<0.000000e+00> : vector<8x1xf32>
    %16 = vector.multi_reduction <add>, %15, %cst_8 [1] : vector<8x8x1xf32> to vector<8x1xf32>
    %17 = vector.shape_cast %16 : vector<8x1xf32> to vector<8x1x1xf32>
    %cst_9 = arith.constant 2.44140625E-4 : f32
    %18 = vector.broadcast %cst_9 : f32 to vector<8x1x1xf32>
    %19 = arith.mulf %17, %18 : vector<8x1x1xf32>
    %cst_10 = arith.constant 9.99999974E-6 : f32
    %20 = vector.broadcast %cst_10 : f32 to vector<8x1x1xf32>
    %21 = arith.addf %19, %20 : vector<8x1x1xf32>
    %22 = math.rsqrt %21 : vector<8x1x1xf32>
    %23 = vector.broadcast %22 : vector<8x1x1xf32> to vector<8x8x512xf32>
    %24 = arith.mulf %12, %23 : vector<8x8x512xf32>
    %cst_11 = arith.constant 0.000000e+00 : f32
    %25 = vector.broadcast %cst_11 : f32 to vector<8x8x512xf32>
    %26 = arith.cmpf oge, %24, %25 : vector<8x8x512xf32>
    %cst_12 = arith.constant 1.000000e-01 : f32
    %27 = vector.broadcast %cst_12 : f32 to vector<8x8x512xf32>
    %28 = arith.mulf %27, %24 : vector<8x8x512xf32>
    %29 = arith.select %26, %24, %28 : vector<8x8x512xi1>, vector<8x8x512xf32>
    %30 = vector.shape_cast %29 : vector<8x8x512xf32> to vector<64x512xf32>
    %c0_13 = arith.constant 0 : index
    %c0_14 = arith.constant 0 : index
    %c0_15 = arith.constant 0 : index
    %31 = vector.load %arg3[%c0_13, %c0_14, %c0_15] : memref<1x64x512xf32, #tpu.memory_space<vmem>>, vector<1x64x512xf32>
    %32 = vector.shape_cast %31 : vector<1x64x512xf32> to vector<64x512xf32>
    %33 = vector.shape_cast %30 : vector<64x512xf32> to vector<1x64x512xf32>
    tpu.vector_store %arg3[%c0_13, %c0_14, %c0_15], %33 {strides = array<i32>} : memref<1x64x512xf32, #tpu.memory_space<vmem>>, vector<1x64x512xf32>,
    return
  }
  func.func @transform_0(%arg0: i32) -> (i32, i32, i32) {
    %c0_i32 = arith.constant 0 : i32
    %c0_i32_0 = arith.constant 0 : i32
    %c0_i32_1 = arith.constant 0 : i32
    return %arg0, %c0_i32, %c0_i32_0 : i32, i32, i32
  }
  func.func @transform_1(%arg0: i32) -> (i32, i32) {
    %c0_i32 = arith.constant 0 : i32
    %c0_i32_0 = arith.constant 0 : i32
    %c0_i32_1 = arith.constant 0 : i32
    return %c0_i32, %c0_i32_0 : i32, i32
  }
  func.func @transform_2(%arg0: i32) -> (i32, i32, i32) {
    %c0_i32 = arith.constant 0 : i32
    %c0_i32_0 = arith.constant 0 : i32
    %c0_i32_1 = arith.constant 0 : i32
    return %arg0, %c0_i32, %c0_i32_0 : i32, i32, i32
  }
}

</mosaic_0001>

<bundles_post_ra>
// kernel: upconv_block_forward.1
= control target key start
LH: loop header
LB: loop body
LE: loop exit
PB: predicated region body
PF: predicated region fallthrough
CT: control target
= control target key end

     0   :  { %s2054_s9 = smov 0   ;;  %s2651_s0 = inlined_call_operand.vmem [shape: bf16[2,432,512], index: 0, kind: input, shape index: {}]   ;;  %s2652_s1 = inlined_call_operand.vmem [shape: bf16[64,432], index: 1, kind: input, shape index: {}]   ;;  %s2653_s2 = inlined_call_operand.vmem [shape: f32[2,64,512], index: 2, kind: output, shape index: {}]  }
   0x1 LB: > { %s1677_s10 = sadd.s32 4294967295, %s2037_s9   ;;  %p1681_p0 = scmp.ge.s32.totalorder %s2037_s9, 1  ;;  %s2037_s9 = sphi %s2054_s9, %s12_s9  }
   0x2   : > { %p112_p1 = scmp.lt.s32.totalorder %s2037_s9, 3 }
   0x4   : > { %p113_p2 = pnand %p1681_p0, %p112_p1 }
   0x5   : > { %p134_p3 = scmp.lt.s32.totalorder (!%p113_p2), %s1677_s10, 1 }
   0x6   : > { %116 = sbr.rel (%p113_p2) target bundleno = 716 (0x2cc), region = 28 }
   0xb   : > { %vm885_vm0 = vcmask 392192   ;;  %v2065_v0 = vld [vmem:[%s2652_s1 + $0xc] ss:$16 sps:$4 sm:$0xff]   ;;  %s2655_s10 = smov (!%p134_p3, %s1677_s10), 1  ;;  %v2072_v1 = vld [vmem:[%s2652_s1 + $0x4] ss:$16 sps:$4 sm:$0xff]  }
   0xc   : > { %1809 = vmatprep.mubr.msk.bf16.mxu1 %vm885_vm0, %v2065_v0  ;;  %s1820_s15 = smul.u32 864, %s2655_s10  ;;  %930 = vmatprep.mubr.bf16.mxu0 %v2072_v1  ;;  %v2132_v48 = vld [vmem:[%s2652_s1 + $0x8] ss:$16 sps:$4 sm:$0xff]   ;;  %v2141_v53 = vld [vmem:[%s2652_s1 + $0x2c] ss:$16 sps:$4 sm:$0xff]  }
   0xd   : > { %v2153_v58 = vld [vmem:[%s2652_s1 + $0x28] ss:$16 sps:$4 sm:$0xff]  }
   0xe   : > { %s2081_s18 = scalar_lea.vmem %s2651_s0, %s1820_s15 }
   0xf   : > { %v1829_v2 = vld [vmem:[%s2081_s18 + $0xe4] ss:$16 sps:$4 sm:$0xff]   ;;  %v1833_v4 = vld [vmem:[%s2081_s18 + $0xe0] ss:$16 sps:$4 sm:$0xff]   ;;  %v1902_v47 = vld [vmem:[%s2081_s18 + $0xec] ss:$16 sps:$4 sm:$0xff]  }
  0x10   : > { %v1831_v3 = vld [vmem:[%s2081_s18 + $0x2e4] ss:$16 sps:$4 sm:$0xff]   ;;  %898 = vmatprep.subr.bf16.mxu0 %v1829_v2  ;;  %v1834_v5 = vld [vmem:[%s2081_s18 + $0x2e0] ss:$16 sps:$4 sm:$0xff]   ;;  %v1900_v49 = vld [vmem:[%s2081_s18 + $0xe8] ss:$16 sps:$4 sm:$0xff]  }
  0x11   : > { %971 = vmatprep.subr.bf16.mxu1 %v1831_v3  ;;  %v1835_v6 = vld [vmem:[%s2081_s18 + $0xc4] ss:$16 sps:$4 sm:$0xff]   ;;  %899 = vmatpush1.bf16.msra.mxu0 %v1833_v4  ;;  %v1839_v8 = vld [vmem:[%s2081_s18 + $0xc0] ss:$16 sps:$4 sm:$0xff]   ;;  %v1908_v52 = vld [vmem:[%s2081_s18 + $0xcc] ss:$16 sps:$4 sm:$0xff]  }
  0x12   : > { %972 = vmatpush1.bf16.msra.mxu1 %v1834_v5  ;;  %v1837_v7 = vld [vmem:[%s2081_s18 + $0x2c4] ss:$16 sps:$4 sm:$0xff]   ;;  %900 = vmatprep.subr.bf16.mxu0 %v1835_v6  ;;  %v1840_v9 = vld [vmem:[%s2081_s18 + $0x2c0] ss:$16 sps:$4 sm:$0xff]   ;;  %v1906_v54 = vld [vmem:[%s2081_s18 + $0xc8] ss:$16 sps:$4 sm:$0xff]  }
  0x13   : > { %973 = vmatprep.subr.bf16.mxu1 %v1837_v7  ;;  %v1841_v10 = vld [vmem:[%s2081_s18 + $0xa4] ss:$16 sps:$4 sm:$0xff]   ;;  %v1845_v12 = vld [vmem:[%s2081_s18 + $0xa0] ss:$16 sps:$4 sm:$0xff]   ;;  %v1914_v57 = vld [vmem:[%s2081_s18 + $0xac] ss:$16 sps:$4 sm:$0xff]  }
  0x14   : > { %v1843_v11 = vld [vmem:[%s2081_s18 + $0x2a4] ss:$16 sps:$4 sm:$0xff]   ;;  %v1846_v13 = vld [vmem:[%s2081_s18 + $0x2a0] ss:$16 sps:$4 sm:$0xff]   ;;  %v1912_v59 = vld [vmem:[%s2081_s18 + $0xa8] ss:$16 sps:$4 sm:$0xff]  }
  0x15   : > { %901 = vmatpush1.bf16.msra.mxu0 %v1839_v8  ;;  %v1847_v14 = vld [vmem:[%s2081_s18 + $0x84] ss:$16 sps:$4 sm:$0xff]   ;;  %v1851_v16 = vld [vmem:[%s2081_s18 + $0x80] ss:$16 sps:$4 sm:$0xff]   ;;  %v1920_v62 = vld [vmem:[%s2081_s18 + $0x8c] ss:$16 sps:$4 sm:$0xff]  }
  0x16   : > { %974 = vmatpush1.bf16.msra.mxu1 %v1840_v9  ;;  %902 = vmatprep.subr.bf16.mxu0 %v1841_v10  ;;  %v1849_v15 = vld [vmem:[%s2081_s18 + $0x284] ss:$16 sps:$4 sm:$0xff]   ;;  %v1852_v17 = vld [vmem:[%s2081_s18 + $0x280] ss:$16 sps:$4 sm:$0xff]   ;;  %v1918_v63 = vld [vmem:[%s2081_s18 + $0x88] ss:$16 sps:$4 sm:$0xff]  }
  0x17   : > { %975 = vmatprep.subr.bf16.mxu1 %v1843_v11  ;;  %v1853_v18 = vld [vmem:[%s2081_s18 + $0x64] ss:$16 sps:$4 sm:$0xff]   ;;  %v1857_v20 = vld [vmem:[%s2081_s18 + $0x60] ss:$16 sps:$4 sm:$0xff]   ;;  %v1926_v4 = vld [vmem:[%s2081_s18 + $0x6c] ss:$16 sps:$4 sm:$0xff]  }
  0x18   : > { %v1855_v19 = vld [vmem:[%s2081_s18 + $0x264] ss:$16 sps:$4 sm:$0xff]   ;;  %v1858_v21 = vld [vmem:[%s2081_s18 + $0x260] ss:$16 sps:$4 sm:$0xff]   ;;  %v2167_v5 = vld [vmem:[%s2652_s1 + $0x4c] ss:$16 sps:$4 sm:$0xff]  }
  0x19   : > { %903 = vmatpush1.bf16.msra.mxu0 %v1845_v12  ;;  %v1859_v22 = vld [vmem:[%s2081_s18 + $0x44] ss:$16 sps:$4 sm:$0xff]   ;;  %v1863_v24 = vld [vmem:[%s2081_s18 + $0x40] ss:$16 sps:$4 sm:$0xff]   ;;  %v1924_v6 = vld [vmem:[%s2081_s18 + $0x68] ss:$16 sps:$4 sm:$0xff]  }
  0x1a   : > { %976 = vmatpush1.bf16.msra.mxu1 %v1846_v13  ;;  %904 = vmatprep.subr.bf16.mxu0 %v1847_v14  ;;  %v1861_v23 = vld [vmem:[%s2081_s18 + $0x244] ss:$16 sps:$4 sm:$0xff]   ;;  %v1864_v25 = vld [vmem:[%s2081_s18 + $0x240] ss:$16 sps:$4 sm:$0xff]   ;;  %v2173_v7 = vld [vmem:[%s2652_s1 + $0x48] ss:$16 sps:$4 sm:$0xff]  }
  0x1b   : > { %977 = vmatprep.subr.bf16.mxu1 %v1849_v15  ;;  %v1865_v26 = vld [vmem:[%s2081_s18 + $0x24] ss:$16 sps:$4 sm:$0xff]   ;;  %v1869_v28 = vld [vmem:[%s2081_s18 + $0x20] ss:$16 sps:$4 sm:$0xff]   ;;  %v1933_v9 = vld [vmem:[%s2081_s18 + $0x4c] ss:$16 sps:$4 sm:$0xff]  }
  0x1c   : > { %v1867_v27 = vld [vmem:[%s2081_s18 + $0x224] ss:$16 sps:$4 sm:$0xff]   ;;  %v1870_v29 = vld [vmem:[%s2081_s18 + $0x220] ss:$16 sps:$4 sm:$0xff]   ;;  %v1936_v10 = vld [vmem:[%s2081_s18 + $0x2ec] ss:$16 sps:$4 sm:$0xff]  }
  0x1d   : > { %905 = vmatpush1.bf16.msra.mxu0 %v1851_v16  ;;  %v1871_v30 = vld [vmem:[%s2081_s18 + $0x4] ss:$16 sps:$4 sm:$0xff]   ;;  %v1875_v32 = vld [vmem:[%s2081_s18] ss:$16 sps:$4 sm:$0xff]   ;;  %v1931_v12 = vld [vmem:[%s2081_s18 + $0x48] ss:$16 sps:$4 sm:$0xff]  }
  0x1e   : > { %978 = vmatpush1.bf16.msra.mxu1 %v1852_v17  ;;  %906 = vmatprep.subr.bf16.mxu0 %v1853_v18  ;;  %v1873_v31 = vld [vmem:[%s2081_s18 + $0x204] ss:$16 sps:$4 sm:$0xff]   ;;  %v1876_v33 = vld [vmem:[%s2081_s18 + $0x200] ss:$16 sps:$4 sm:$0xff]   ;;  %v1934_v13 = vld [vmem:[%s2081_s18 + $0x2e8] ss:$16 sps:$4 sm:$0xff]  }
  0x1f   : > { %979 = vmatprep.subr.bf16.mxu1 %v1855_v19  ;;  %v1877_v34 = vld [vmem:[%s2081_s18 + $0x1e4] ss:$16 sps:$4 sm:$0xff]   ;;  %v1881_v36 = vld [vmem:[%s2081_s18 + $0x1e0] ss:$16 sps:$4 sm:$0xff]   ;;  %v1939_v14 = vld [vmem:[%s2081_s18 + $0x2c] ss:$16 sps:$4 sm:$0xff]  }
  0x20   : > { %v1879_v35 = vld [vmem:[%s2081_s18 + $0x344] ss:$16 sps:$4 sm:$0xff]   ;;  %v1882_v37 = vld [vmem:[%s2081_s18 + $0x340] ss:$16 sps:$4 sm:$0xff]   ;;  %v1942_v16 = vld [vmem:[%s2081_s18 + $0x2cc] ss:$16 sps:$4 sm:$0xff]  }
  0x21   : > { %907 = vmatpush1.bf16.msra.mxu0 %v1857_v20  ;;  %v1883_v38 = vld [vmem:[%s2081_s18 + $0x1c4] ss:$16 sps:$4 sm:$0xff]   ;;  %v1887_v40 = vld [vmem:[%s2081_s18 + $0x1c0] ss:$16 sps:$4 sm:$0xff]   ;;  %v2198_v17 = vld [vmem:[%s2652_s1 + $0x6c] ss:$16 sps:$4 sm:$0xff]  }
  0x22   : > { %980 = vmatpush1.bf16.msra.mxu1 %v1858_v21  ;;  %908 = vmatprep.subr.bf16.mxu0 %v1859_v22  ;;  %v1885_v39 = vld [vmem:[%s2081_s18 + $0x324] ss:$16 sps:$4 sm:$0xff]   ;;  %v1888_v41 = vld [vmem:[%s2081_s18 + $0x320] ss:$16 sps:$4 sm:$0xff]   ;;  %v1937_v18 = vld [vmem:[%s2081_s18 + $0x28] ss:$16 sps:$4 sm:$0xff]  }
  0x23   : > { %981 = vmatprep.subr.bf16.mxu1 %v1861_v23  ;;  %v1889_v42 = vld [vmem:[%s2081_s18 + $0x1a4] ss:$16 sps:$4 sm:$0xff]   ;;  %v1893_v44 = vld [vmem:[%s2081_s18 + $0x1a0] ss:$16 sps:$4 sm:$0xff]   ;;  %v2205_v19 = vld [vmem:[%s2652_s1 + $0x68] ss:$16 sps:$4 sm:$0xff]  }
  0x24   : > { %v1891_v43 = vld [vmem:[%s2081_s18 + $0x304] ss:$16 sps:$4 sm:$0xff]   ;;  %v1894_v45 = vld [vmem:[%s2081_s18 + $0x300] ss:$16 sps:$4 sm:$0xff]   ;;  %v1940_v20 = vld [vmem:[%s2081_s18 + $0x2c8] ss:$16 sps:$4 sm:$0xff]  }
  0x25   : > { %909 = vmatpush1.bf16.msra.mxu0 %v1863_v24  ;;  %v1898_v46 = vld [vmem:[%s2081_s18 + $0x184] ss:$16 sps:$4 sm:$0xff]   ;;  %v1903_v50 = vld [vmem:[%s2081_s18 + $0x180] ss:$16 sps:$4 sm:$0xff]   ;;  %v1945_v21 = vld [vmem:[%s2081_s18 + $0xc] ss:$16 sps:$4 sm:$0xff]  }
  0x26   : > { %982 = vmatpush1.bf16.msra.mxu1 %v1864_v25  ;;  %910 = vmatprep.subr.bf16.mxu0 %v1865_v26  ;;  %v1904_v51 = vld [vmem:[%s2081_s18 + $0x164] ss:$16 sps:$4 sm:$0xff]   ;;  %v1909_v55 = vld [vmem:[%s2081_s18 + $0x160] ss:$16 sps:$4 sm:$0xff]   ;;  %v1948_v22 = vld [vmem:[%s2081_s18 + $0x2ac] ss:$16 sps:$4 sm:$0xff]  }
  0x27   : > { %983 = vmatprep.subr.bf16.mxu1 %v1867_v27  ;;  %v1910_v56 = vld [vmem:[%s2081_s18 + $0x144] ss:$16 sps:$4 sm:$0xff]   ;;  %v1915_v60 = vld [vmem:[%s2081_s18 + $0x140] ss:$16 sps:$4 sm:$0xff]   ;;  %v1943_v23 = vld [vmem:[%s2081_s18 + $0x8] ss:$16 sps:$4 sm:$0xff]  }
  0x28   : > { %v1916_v61 = vld [vmem:[%s2081_s18 + $0x124] ss:$16 sps:$4 sm:$0xff]   ;;  %v1921_v2 = vld [vmem:[%s2081_s18 + $0x120] ss:$16 sps:$4 sm:$0xff]   ;;  %v1946_v25 = vld [vmem:[%s2081_s18 + $0x2a8] ss:$16 sps:$4 sm:$0xff]  }
  0x29   : > { %911 = vmatpush1.bf16.msra.mxu0 %v1869_v28  ;;  %v1922_v3 = vld [vmem:[%s2081_s18 + $0x104] ss:$16 sps:$4 sm:$0xff]   ;;  %v1927_v8 = vld [vmem:[%s2081_s18 + $0x100] ss:$16 sps:$4 sm:$0xff]   ;;  %v1951_v26 = vld [vmem:[%s2081_s18 + $0x1ec] ss:$16 sps:$4 sm:$0xff]  }
  0x2a   : > { %984 = vmatpush1.bf16.msra.mxu1 %v1870_v29  ;;  %912 = vmatprep.subr.bf16.mxu0 %v1871_v30  ;;  %v2183_v11 = vld [vmem:[%s2652_s1] ss:$16 sps:$4 sm:$0xff]   ;;  %v2192_v15 = vld [vmem:[%s2652_s1 + $0x24] ss:$16 sps:$4 sm:$0xff]   ;;  %v1954_v27 = vld [vmem:[%s2081_s18 + $0x28c] ss:$16 sps:$4 sm:$0xff]  }
  0x2b   : > { %985 = vmatprep.subr.bf16.mxu1 %v1873_v31  ;;  %v2217_v24 = vld [vmem:[%s2652_s1 + $0x20] ss:$16 sps:$4 sm:$0xff]   ;;  %v2226_v28 = vld [vmem:[%s2652_s1 + $0x44] ss:$16 sps:$4 sm:$0xff]   ;;  %v1949_v29 = vld [vmem:[%s2081_s18 + $0x1e8] ss:$16 sps:$4 sm:$0xff]  }
  0x2c   : > { %v1952_v30 = vld [vmem:[%s2081_s18 + $0x288] ss:$16 sps:$4 sm:$0xff]   ;;  %v1963_v31 = vld [vmem:[%s2081_s18 + $0x1cc] ss:$16 sps:$4 sm:$0xff]  }
  0x2d   : > { %913 = vmatpush1.bf16.msra.mxu0 %v1875_v32  ;;  %v1966_v32 = vld [vmem:[%s2081_s18 + $0x26c] ss:$16 sps:$4 sm:$0xff]  }
  0x2e   : > { %986 = vmatpush1.bf16.msra.mxu1 %v1876_v33  ;;  %914 = vmatprep.subr.bf16.mxu0 %v1877_v34  ;;  %v1961_v33 = vld [vmem:[%s2081_s18 + $0x1c8] ss:$16 sps:$4 sm:$0xff]  }
  0x2f   : > { %997 = vmatprep.subr.bf16.mxu1 %v1879_v35  ;;  %v1964_v34 = vld [vmem:[%s2081_s18 + $0x268] ss:$16 sps:$4 sm:$0xff]   ;;  %v1969_v35 = vld [vmem:[%s2081_s18 + $0x1ac] ss:$16 sps:$4 sm:$0xff]  }
  0x31   : > { %915 = vmatpush2.bf16.msra.mxu0 %v1881_v36  ;;  %v1972_v36 = vld [vmem:[%s2081_s18 + $0x24c] ss:$16 sps:$4 sm:$0xff]  }
  0x32   : > { %998 = vmatpush2.bf16.msra.mxu1 %v1882_v37  ;;  %916 = vmatprep.subr.bf16.mxu0 %v1883_v38  ;;  %v2247_v37 = vld [vmem:[%s2652_s1 + $0x64] ss:$16 sps:$4 sm:$0xff]   ;;  %v1967_v38 = vld [vmem:[%s2081_s18 + $0x1a8] ss:$16 sps:$4 sm:$0xff]  }
  0x33   : > { %999 = vmatprep.subr.bf16.mxu1 %v1885_v39  ;;  %v1970_v39 = vld [vmem:[%s2081_s18 + $0x248] ss:$16 sps:$4 sm:$0xff]  }
  0x35   : > { %917 = vmatpush2.bf16.msra.mxu0 %v1887_v40  ;;  %v1981_v40 = vld [vmem:[%s2081_s18 + $0x18c] ss:$16 sps:$4 sm:$0xff]  }
  0x36   : > { %1000 = vmatpush2.bf16.msra.mxu1 %v1888_v41  ;;  %918 = vmatprep.subr.bf16.mxu0 %v1889_v42  ;;  %v1984_v41 = vld [vmem:[%s2081_s18 + $0x22c] ss:$16 sps:$4 sm:$0xff]   ;;  %v1995_v42 = vld [vmem:[%s2652_s1 + $0x60] ss:$16 sps:$4 sm:$0xff]  }
  0x37   : > { %1001 = vmatprep.subr.bf16.mxu1 %v1891_v43  ;;  %v1979_v43 = vld [vmem:[%s2081_s18 + $0x188] ss:$16 sps:$4 sm:$0xff]  }
  0x39   : > { %919 = vmatpush2.bf16.msra.mxu0 %v1893_v44  ;;  %v1982_v44 = vld [vmem:[%s2081_s18 + $0x228] ss:$16 sps:$4 sm:$0xff]  }
  0x3a   : > { %1002 = vmatpush2.bf16.msra.mxu1 %v1894_v45  ;;  %920 = vmatprep.subr.bf16.mxu0 %v1898_v46  ;;  %v1987_v45 = vld [vmem:[%s2081_s18 + $0x16c] ss:$16 sps:$4 sm:$0xff]  }
  0x3b   : > { %1044 = vmatprep.subr.bf16.mxu1 %v1902_v47  ;;  %v1990_v46 = vld [vmem:[%s2081_s18 + $0x20c] ss:$16 sps:$4 sm:$0xff]   ;;  %v1985_v47 = vld [vmem:[%s2081_s18 + $0x168] ss:$16 sps:$4 sm:$0xff]  }
  0x3d   : > { %1004 = vmatmul.mubr.bf16.vlgmr.msra.gmra.mxu1 %v2132_v48  ;;  %921 = vmatpush2.bf16.msra.mxu0 %v1903_v50  ;;  %v1999_v50 = vld [vmem:[%s2081_s18 + $0x14c] ss:$16 sps:$4 sm:$0xff]  }
  0x3e   : > { %1045 = vmatpush1.bf16.msra.mxu1 %v1900_v49  ;;  %922 = vmatprep.subr.bf16.mxu0 %v1904_v51  ;;  %v1988_v49 = vld [vmem:[%s2081_s18 + $0x208] ss:$16 sps:$4 sm:$0xff]   ;;  %v2002_v51 = vld [vmem:[%s2081_s18 + $0x34c] ss:$16 sps:$4 sm:$0xff]  }
  0x3f   : > { %1046 = vmatprep.subr.bf16.mxu1 %v1908_v52  ;;  %1810 = vmatprep.mubr.msk.bf16.mxu1 %vm885_vm0, %v2141_v53  ;;  %v1997_v52 = vld [vmem:[%s2081_s18 + $0x148] ss:$16 sps:$4 sm:$0xff]  }
  0x41   : > { %923 = vmatpush2.bf16.msra.mxu0 %v1909_v55  ;;  %v2005_v55 = vld [vmem:[%s2081_s18 + $0x12c] ss:$16 sps:$4 sm:$0xff]  }
  0x42   : > { %1047 = vmatpush1.bf16.msra.mxu1 %v1906_v54  ;;  %924 = vmatprep.subr.bf16.mxu0 %v1910_v56  ;;  %v2000_v54 = vld [vmem:[%s2081_s18 + $0x348] ss:$16 sps:$4 sm:$0xff]   ;;  %v2008_v56 = vld [vmem:[%s2081_s18 + $0x32c] ss:$16 sps:$4 sm:$0xff]  }
  0x43   : > { %1048 = vmatprep.subr.bf16.mxu1 %v1914_v57  ;;  %v2003_v57 = vld [vmem:[%s2081_s18 + $0x128] ss:$16 sps:$4 sm:$0xff]  }
  0x45   : > { %1014 = vmatmul.mubr.bf16.gmra.mxu1 %v2153_v58  ;;  %925 = vmatpush2.bf16.msra.mxu0 %v1915_v60  ;;  %v2011_v60 = vld [vmem:[%s2081_s18 + $0x10c] ss:$16 sps:$4 sm:$0xff]  }
  0x46   : > { %1049 = vmatpush1.bf16.msra.mxu1 %v1912_v59  ;;  %926 = vmatprep.subr.bf16.mxu0 %v1916_v61  ;;  %v2006_v59 = vld [vmem:[%s2081_s18 + $0x328] ss:$16 sps:$4 sm:$0xff]   ;;  %v2014_v61 = vld [vmem:[%s2081_s18 + $0x30c] ss:$16 sps:$4 sm:$0xff]  }
  0x47   : > { %1050 = vmatprep.subr.bf16.mxu1 %v1920_v62  ;;  %1811 = vmatprep.mubr.msk.bf16.mxu1 %vm885_vm0, %v2167_v5  ;;  %v2012_v62 = vld [vmem:[%s2081_s18 + $0x308] ss:$16 sps:$4 sm:$0xff]  }
  0x49   : > { %927 = vmatpush2.bf16.msra.mxu0 %v1921_v2 }
  0x4a   : > { %1051 = vmatpush1.bf16.msra.mxu1 %v1918_v63  ;;  %928 = vmatprep.subr.bf16.mxu0 %v1922_v3 }
  0x4b   : > { %1052 = vmatprep.subr.bf16.mxu1 %v1926_v4 }
  0x4d   : > { %1024 = vmatmul.mubr.bf16.gmra.mxu1 %v2173_v7  ;;  %929 = vmatpush2.bf16.msra.mxu0 %v1927_v8 }
  0x4e   : > { %1053 = vmatpush1.bf16.msra.mxu1 %v1924_v6  ;;  %1117 = vmatprep.subr.bf16.mxu0 %v1936_v10 }
  0x4f   : > { %1054 = vmatprep.subr.bf16.mxu1 %v1933_v9  ;;  %1812 = vmatprep.mubr.msk.bf16.mxu1 %vm885_vm0, %v2198_v17 }
  0x50   : > { %931 = vmatmul.mubr.bf16.vlgmr.msra.gmra.mxu0 %v2183_v11 }
  0x51   : > { %1118 = vmatpush1.bf16.msra.mxu0 %v1934_v13  ;;  %940 = vmatprep.mubr.bf16.mxu0 %v2192_v15 }
  0x52   : > { %1055 = vmatpush1.bf16.msra.mxu1 %v1931_v12  ;;  %1119 = vmatprep.subr.bf16.mxu0 %v1942_v16 }
  0x53   : > { %1056 = vmatprep.subr.bf16.mxu1 %v1939_v14 }
  0x55   : > { %1034 = vmatmul.mubr.bf16.gmra.mxu1 %v2205_v19  ;;  %1120 = vmatpush1.bf16.msra.mxu0 %v1940_v20 }
  0x56   : > { %1057 = vmatpush1.bf16.msra.mxu1 %v1937_v18  ;;  %1121 = vmatprep.subr.bf16.mxu0 %v1948_v22 }
  0x57   : > { %1058 = vmatprep.subr.bf16.mxu1 %v1945_v21  ;;  %1076 = vmatprep.mubr.bf16.mxu1 %v2072_v1  ;;  %v2238_v1 = vld [vmem:[%s2652_s1 + $0x40] ss:$16 sps:$4 sm:$0xff]  }
  0x58   : > { %941 = vmatmul.mubr.bf16.gmra.mxu0 %v2217_v24 }
  0x59   : > { %1122 = vmatpush1.bf16.msra.mxu0 %v1946_v25  ;;  %950 = vmatprep.mubr.bf16.mxu0 %v2226_v28 }
  0x5a   : > { %1059 = vmatpush1.bf16.msra.mxu1 %v1943_v23  ;;  %1123 = vmatprep.subr.bf16.mxu0 %v1954_v27 }
  0x5b   : > { %1060 = vmatprep.subr.bf16.mxu1 %v1951_v26 }
  0x5d   : > { %1124 = vmatpush1.bf16.msra.mxu0 %v1952_v30 }
  0x5e   : > { %1061 = vmatpush2.bf16.msra.mxu1 %v1949_v29  ;;  %1125 = vmatprep.subr.bf16.mxu0 %v1966_v32 }
  0x5f   : > { %1062 = vmatprep.subr.bf16.mxu1 %v1963_v31 }
  0x60   : > { %951 = vmatmul.mubr.bf16.gmra.mxu0 %v2238_v1 }
  0x61   : > { %1126 = vmatpush1.bf16.msra.mxu0 %v1964_v34  ;;  %960 = vmatprep.mubr.bf16.mxu0 %v2247_v37 }
  0x62   : > { %1063 = vmatpush2.bf16.msra.mxu1 %v1961_v33  ;;  %1127 = vmatprep.subr.bf16.mxu0 %v1972_v36 }
  0x63   : > { %1064 = vmatprep.subr.bf16.mxu1 %v1969_v35 }
  0x65   : > { %1128 = vmatpush1.bf16.msra.mxu0 %v1970_v39 }
  0x66   : > { %1065 = vmatpush2.bf16.msra.mxu1 %v1967_v38  ;;  %1129 = vmatprep.subr.bf16.mxu0 %v1984_v41 }
  0x67   : > { %1066 = vmatprep.subr.bf16.mxu1 %v1981_v40 }
  0x68   : > { %961 = vmatmul.mubr.bf16.gmra.mxu0 %v1995_v42 }
  0x69   : > { %1130 = vmatpush1.bf16.msra.mxu0 %v1982_v44  ;;  %1813 = vmatprep.mubr.msk.bf16.mxu0 %vm885_vm0, %v2065_v0  ;;  %v2009_v0 = vld [vmem:[%s2081_s18 + $0x108] ss:$16 sps:$4 sm:$0xff]   ;;  %s1819_s18 = sshll.u32 %s2655_s10, 8 }
  0x6a   : > { %1067 = vmatpush2.bf16.msra.mxu1 %v1979_v43  ;;  %1131 = vmatprep.subr.bf16.mxu0 %v1990_v46  ;;  %s2585_s10 = scalar_lea.vmem %s2653_s2, %s1819_s18 }
  0x6b   : > { %1068 = vmatprep.subr.bf16.mxu1 %v1987_v45 }
  0x6d   : > { %1132 = vmatpush1.bf16.msra.mxu0 %v1988_v49 }
  0x6e   : > { %1069 = vmatpush2.bf16.msra.mxu1 %v1985_v47  ;;  %1143 = vmatprep.subr.bf16.mxu0 %v2002_v51 }
  0x6f   : > { %1070 = vmatprep.subr.bf16.mxu1 %v1999_v50 }
  0x71   : > { %1144 = vmatpush2.bf16.msra.mxu0 %v2000_v54 }
  0x72   : > { %1071 = vmatpush2.bf16.msra.mxu1 %v1997_v52  ;;  %1145 = vmatprep.subr.bf16.mxu0 %v2008_v56 }
  0x73   : > { %1072 = vmatprep.subr.bf16.mxu1 %v2005_v55 }
  0x75   : > { %1146 = vmatpush2.bf16.msra.mxu0 %v2006_v59 }
  0x76   : > { %1073 = vmatpush2.bf16.msra.mxu1 %v2003_v57  ;;  %1147 = vmatprep.subr.bf16.mxu0 %v2014_v61 }
  0x77   : > { %1074 = vmatprep.subr.bf16.mxu1 %v2011_v60 }
  0x79   : > { %1148 = vmatpush2.bf16.msra.mxu0 %v2012_v62 }
  0x7a   : > { %1075 = vmatpush2.bf16.msra.mxu1 %v2009_v0 }
  0x7c   : > { %1150 = vmatmul.mubr.bf16.vlgmr.msra.gmra.mxu0 %v2132_v48 }
  0x7d   : > { %1077 = vmatmul.mubr.bf16.vlgmr.msra.gmra.mxu1 %v2183_v11  ;;  %1814 = vmatprep.mubr.msk.bf16.mxu0 %vm885_vm0, %v2141_v53 }
  0x7e   : > { %1086 = vmatprep.mubr.bf16.mxu1 %v2192_v15 }
  0x84   : > { %1160 = vmatmul.mubr.bf16.gmra.mxu0 %v2153_v58 }
  0x85   : > { %1087 = vmatmul.mubr.bf16.gmra.mxu1 %v2217_v24  ;;  %1815 = vmatprep.mubr.msk.bf16.mxu0 %vm885_vm0, %v2167_v5 }
  0x86   : > { %1096 = vmatprep.mubr.bf16.mxu1 %v2226_v28 }
  0x8c   : > { %1170 = vmatmul.mubr.bf16.gmra.mxu0 %v2173_v7 }
  0x8d   : > { %1097 = vmatmul.mubr.bf16.gmra.mxu1 %v2238_v1  ;;  %1816 = vmatprep.mubr.msk.bf16.mxu0 %vm885_vm0, %v2198_v17 }
  0x8e   : > { %1106 = vmatprep.mubr.bf16.mxu1 %v2247_v37 }
  0x94   : > { %1180 = vmatmul.mubr.bf16.gmra.mxu0 %v2205_v19 }
  0x95   : > { %1107 = vmatmul.mubr.bf16.gmra.mxu1 %v1995_v42 }
  0xfd   : > { %v1005_v48 = vpop.f32.mrf.mxu1 }
  0xff   : > { %v1007_v53 = vpop.f32.mrf.mxu1 }
 0x101   : > { %v1009_v58 = vpop.f32.mrf.mxu1 }
 0x103   : > { %v1011_v63 = vpop.f32.mrf.mxu1 }
 0x105   : > { %v1015_v2 = vpop.f32.mrf.mxu1 }
 0x107   : > { %v1017_v5 = vpop.f32.mrf.mxu1 }
 0x109   : > { %v1019_v9 = vpop.f32.mrf.mxu1 }
 0x10b   : > { %v1021_v11 = vpop.f32.mrf.mxu1 }
 0x10d   : > { %v1025_v14 = vpop.f32.mrf.mxu1 }
 0x10f   : > { %v1027_v17 = vpop.f32.mrf.mxu1 }
 0x110   : > { %v932_v3 = vpop.f32.mrf.mxu0 }
 0x111   : > { %v1029_v19 = vpop.f32.mrf.mxu1  ;;  %v2314_v31 = vadd.f32 %v1005_v48, %v932_v3 }
 0x112   : > { %v934_v4 = vpop.f32.mrf.mxu0 }
 0x113   : > { %v1031_v21 = vpop.f32.mrf.mxu1  ;;  %v2308_v28 = vadd.f32 %v1007_v53, %v934_v4 }
 0x114   : > { %v936_v6 = vpop.f32.mrf.mxu0 }
 0x115   : > { %v2298_v23 = vpop.f32.mrf.mxu1  ;;  %v1190_v33 = vadd.f32 %v2308_v28, %v2314_v31  ;;  %v2322_v38 = vadd.f32 %v1009_v58, %v936_v6 }
 0x116   : > { %v938_v8 = vpop.f32.mrf.mxu0 }
 0x117   : > { %v2302_v25 = vpop.f32.mrf.mxu1  ;;  %v2318_v34 = vadd.f32 %v1011_v63, %v938_v8 }
 0x118   : > { %v942_v7 = vpop.f32.mrf.mxu0 }
 0x119   : > { %v2306_v27 = vpop.f32.mrf.mxu1  ;;  %v2327_v41 = vadd.f32 %v1015_v2, %v942_v7  ;;  %v1195_v45 = vadd.f32 %v2318_v34, %v2322_v38 }
 0x11a   : > { %v944_v10 = vpop.f32.mrf.mxu0 }
 0x11b   : > { %v2312_v30 = vpop.f32.mrf.mxu1  ;;  %v2329_v42 = vadd.f32 %v1017_v5, %v944_v10 }
 0x11c   : > { %v946_v12 = vpop.f32.mrf.mxu0 }
 0x11d   : > { %v1200_v54 = vadd.f32 %v2329_v42, %v2327_v41  ;;  %v2341_v57 = vadd.f32 %v1019_v9, %v946_v12 }
 0x11e   : > { %v948_v13 = vpop.f32.mrf.mxu0 }
 0x11f   : > { %v2343_v59 = vadd.f32 %v1021_v11, %v948_v13 }
 0x120   : > { %v952_v15 = vpop.f32.mrf.mxu0 }
 0x121   : > { %v2351_v58 = vadd.f32 %v1025_v14, %v952_v15  ;;  %v1205_v4 = vadd.f32 %v2343_v59, %v2341_v57 }
 0x122   : > { %v954_v16 = vpop.f32.mrf.mxu0 }
 0x123   : > { %v2353_v63 = vadd.f32 %v1027_v17, %v954_v16 }
 0x124   : > { %v2294_v18 = vpop.f32.mrf.mxu0 }
 0x125   : > { %v1210_v11 = vadd.f32 %v2353_v63, %v2351_v58  ;;  %v2366_v14 = vadd.f32 %v1029_v19, %v2294_v18 }
 0x126   : > { %v958_v20 = vpop.f32.mrf.mxu0 }
 0x127   : > { %v2368_v15 = vadd.f32 %v1031_v21, %v958_v20 }
 0x128   : > { %v2296_v22 = vpop.f32.mrf.mxu0 }
 0x129   : > { %v1215_v21 = vadd.f32 %v2368_v15, %v2366_v14 }
 0x12a   : > { %v2300_v24 = vpop.f32.mrf.mxu0 }
 0x12b   : > { %v2382_v18 = vadd.f32 %v2302_v25, %v2300_v24 }
 0x12c   : > { %v2304_v26 = vpop.f32.mrf.mxu0 }
 0x12d   : > { %v2396_v25 = vadd.f32 %v2306_v27, %v2304_v26 }
 0x12e   : > { %v2310_v29 = vpop.f32.mrf.mxu0 }
 0x13c   : > { %v1151_v1 = vpop.f32.mrf.mxu0 }
 0x13d   : > { %v1078_v32 = vpop.f32.mrf.mxu1 }
 0x13e   : > { %v2320_v35 = vadd.f32 %v1151_v1, %v1078_v32  ;;  %v1153_v37 = vpop.f32.mrf.mxu0 }
 0x13f   : > { %v1080_v36 = vpop.f32.mrf.mxu1 }
 0x140   : > { %v2324_v39 = vadd.f32 %v1153_v37, %v1080_v36  ;;  %v1191_v40 = vadd.f32 %v1190_v33, %v2320_v35  ;;  %v1155_v44 = vpop.f32.mrf.mxu0  ;;  %v2378_v37 = vadd.f32 %v2298_v23, %v2296_v22 }
 0x141   : > { %v1082_v43 = vpop.f32.mrf.mxu1 }
 0x142   : > { %v2333_v46 = vadd.f32 %v1155_v44, %v1082_v43  ;;  %v1192_v47 = vadd.f32 %v1191_v40, %v2324_v39  ;;  %v1157_v50 = vpop.f32.mrf.mxu0  ;;  %v1220_v22 = vadd.f32 %v2382_v18, %v2378_v37 }
 0x143   : > { %v1084_v49 = vpop.f32.mrf.mxu1 }
 0x144   : > { %v1196_v51 = vadd.f32 %v1195_v45, %v2333_v46  ;;  %v2337_v52 = vadd.f32 %v1157_v50, %v1084_v49  ;;  %1193 = vadd.xlane.f32.xlu0 %v1192_v47  ;;  %v1161_v56 = vpop.f32.mrf.mxu0  ;;  %v2400_v50 = vadd.f32 %v2312_v30, %v2310_v29 }
 0x145   : > { %v1088_v55 = vpop.f32.mrf.mxu1 }
 0x146   : > { %v2345_v60 = vadd.f32 %v1161_v56, %v1088_v55  ;;  %v1197_v61 = vadd.f32 %v1196_v51, %v2337_v52  ;;  %v1163_v62 = vpop.f32.mrf.mxu0  ;;  %v1225_v26 = vadd.f32 %v2400_v50, %v2396_v25 }
 0x147   : > { %v1090_v0 = vpop.f32.mrf.mxu1 }
 0x148   : > { %v2348_v48 = vadd.f32 %v1163_v62, %v1090_v0  ;;  %1198 = vadd.xlane.f32.xlu0 %v1197_v61  ;;  %v1201_v53 = vadd.f32 %v1200_v54, %v2345_v60  ;;  %v1165_v3 = vpop.f32.mrf.mxu0 }
 0x149   : > { %v1092_v2 = vpop.f32.mrf.mxu1 }
 0x14a   : > { %v2357_v5 = vadd.f32 %v1165_v3, %v1092_v2  ;;  %v1202_v6 = vadd.f32 %v1201_v53, %v2348_v48  ;;  %v1167_v9 = vpop.f32.mrf.mxu0 }
 0x14b   : > { %v1094_v8 = vpop.f32.mrf.mxu1 }
 0x14c   : > { %v1206_v7 = vadd.f32 %v1205_v4, %v2357_v5  ;;  %v2361_v10 = vadd.f32 %v1167_v9, %v1094_v8  ;;  %1203 = vadd.xlane.f32.xlu1 %v1202_v6  ;;  %v1171_v13 = vpop.f32.mrf.mxu0 }
 0x14d   : > { %v1098_v12 = vpop.f32.mrf.mxu1 }
 0x14e   : > { %v2370_v16 = vadd.f32 %v1171_v13, %v1098_v12  ;;  %v1207_v17 = vadd.f32 %v1206_v7, %v2361_v10  ;;  %v1173_v1 = vpop.f32.mrf.mxu0 }
 0x14f   : > { %v1100_v32 = vpop.f32.mrf.mxu1 }
 0x150   : > { %v1211_v33 = vadd.f32 %v1210_v11, %v2370_v16  ;;  %v2374_v36 = vadd.f32 %v1173_v1, %v1100_v32  ;;  %1208 = vadd.xlane.f32.xlu1 %v1207_v17  ;;  %v1175_v20 = vpop.f32.mrf.mxu0 }
 0x151   : > { %v1102_v19 = vpop.f32.mrf.mxu1 }
 0x152   : > { %v2386_v40 = vadd.f32 %v1175_v20, %v1102_v19  ;;  %v1212_v43 = vadd.f32 %v1211_v33, %v2374_v36  ;;  %v1177_v45 = vpop.f32.mrf.mxu0 }
 0x153   : > { %v1104_v44 = vpop.f32.mrf.mxu1 }
 0x154   : > { %v1216_v47 = vadd.f32 %v1215_v21, %v2386_v40  ;;  %v2390_v49 = vadd.f32 %v1177_v45, %v1104_v44  ;;  %1213 = vadd.xlane.f32.xlu0 %v1212_v43  ;;  %v1181_v24 = vpop.f32.mrf.mxu0 }
 0x155   : > { %v1108_v23 = vpop.f32.mrf.mxu1 }
 0x156   : > { %v2402_v51 = vadd.f32 %v1181_v24, %v1108_v23  ;;  %v1217_v54 = vadd.f32 %v1216_v47, %v2390_v49  ;;  %v1183_v56 = vpop.f32.mrf.mxu0 }
 0x157   : > { %v1110_v55 = vpop.f32.mrf.mxu1 }
 0x158   : > { %v1221_v61 = vadd.f32 %v1220_v22, %v2402_v51  ;;  %v2406_v0 = vadd.f32 %v1183_v56, %v1110_v55  ;;  %1218 = vadd.xlane.f32.xlu1 %v1217_v54  ;;  %v1185_v53 = vpop.f32.mrf.mxu0 }
 0x159   : > { %v1112_v62 = vpop.f32.mrf.mxu1 }
 0x15a   : > { %v2410_v27 = vadd.f32 %v1185_v53, %v1112_v62  ;;  %v1222_v29 = vadd.f32 %v1221_v61, %v2406_v0  ;;  %v1187_v2 = vpop.f32.mrf.mxu0 }
 0x15b   : > { %v1114_v30 = vpop.f32.mrf.mxu1 }
 0x15c   : > { %v1226_v3 = vadd.f32 %v1225_v26, %v2410_v27  ;;  %v2414_v4 = vadd.f32 %v1187_v2, %v1114_v30  ;;  %1223 = vadd.xlane.f32.xlu0 %v1222_v29 }
 0x15e   : > { %v1227_v6 = vadd.f32 %v1226_v3, %v2414_v4 }
 0x160   : > { %1228 = vadd.xlane.f32.xlu1 %v1227_v6 }
 0x1cd   : > { %v1194_v8 = vpop.xlane.xlu0 %1193 }
 0x1ce   : > { %v1230_v9 = vrot.slane %v1194_v8, 4 }
 0x1d0   : > { %v1231_v7 = vadd.f32 %v1230_v9, %v1194_v8 }
 0x1d1   : > { %v1199_v11 = vpop.xlane.xlu0 %1198 }
 0x1d2   : > { %v1232_v12 = vrot.slane %v1231_v7, 2  ;;  %v1236_v13 = vrot.slane %v1199_v11, 4 }
 0x1d4   : > { %v1233_v17 = vadd.f32 %v1232_v12, %v1231_v7  ;;  %v1237_v32 = vadd.f32 %v1236_v13, %v1199_v11 }
 0x1d5   : > { %v1204_v1 = vpop.xlane.xlu1 %1203 }
 0x1d6   : > { %v1234_v33 = vrot.slane %v1233_v17, 1  ;;  %v1238_v19 = vrot.slane %v1237_v32, 2  ;;  %v1242_v20 = vrot.slane %v1204_v1, 4 }
 0x1d8   : > { %v1235_v21 = vadd.f32 %v1234_v33, %v1233_v17  ;;  %v1239_v43 = vadd.f32 %v1238_v19, %v1237_v32  ;;  %v1243_v44 = vadd.f32 %v1242_v20, %v1204_v1 }
 0x1d9   : > { %v1209_v45 = vpop.xlane.xlu1 %1208 }
 0x1da   : > { %v1278_v47 = vmul.f32 0.00024414063, %v1235_v21  ;;  %v1240_v22 = vrot.slane %v1239_v43, 1  ;;  %v1244_v23 = vrot.slane %v1243_v44, 2  ;;  %v1248_v24 = vrot.slane %v1209_v45, 4 }
 0x1dc   : > { %v1241_v54 = vadd.f32 %v1240_v22, %v1239_v43  ;;  %v1245_v55 = vadd.f32 %v1244_v23, %v1243_v44  ;;  %v1249_v56 = vadd.f32 %v1248_v24, %v1209_v45  ;;  %v2418_v61 = vsub.f32 %v2314_v31, %v1278_v47 }
 0x1dd   : > { %v1214_v62 = vpop.xlane.xlu0 %1213  ;;  %v2421_v53 = vsub.f32 %v2308_v28, %v1278_v47  ;;  %v2424_v26 = vsub.f32 %v2320_v35, %v1278_v47  ;;  %v2427_v29 = vsub.f32 %v2324_v39, %v1278_v47 }
 0x1de   : > { %v1279_v30 = vmul.f32 0.00024414063, %v1241_v54  ;;  %v1246_v2 = vrot.slane %v1245_v55, 1  ;;  %v1250_v3 = vrot.slane %v1249_v56, 2  ;;  %v1254_v6 = vrot.slane %v1214_v62, 4 }
 0x1df   : > { %v1318_v8 = vmul.f32 %v2418_v61, %v2418_v61  ;;  %v1319_v31 = vmul.f32 %v2421_v53, %v2421_v53  ;;  %v1320_v28 = vmul.f32 %v2424_v26, %v2424_v26  ;;  %v1321_v12 = vmul.f32 %v2427_v29, %v2427_v29 }
 0x1e0   : > { %v1247_v9 = vadd.f32 %v1246_v2, %v1245_v55  ;;  %v1251_v7 = vadd.f32 %v1250_v3, %v1249_v56  ;;  %v1255_v35 = vadd.f32 %v1254_v6, %v1214_v62  ;;  %v2436_v11 = vsub.f32 %v2322_v38, %v1279_v30 }
 0x1e1   : > { %v1219_v39 = vpop.xlane.xlu1 %1218  ;;  %v1350_v13 = vadd.f32 %v1319_v31, %v1318_v8  ;;  %v2441_v17 = vsub.f32 %v2318_v34, %v1279_v30  ;;  %v2444_v32 = vsub.f32 %v2333_v46, %v1279_v30  ;;  %v2447_v43 = vsub.f32 %v2337_v52, %v1279_v30 }
 0x1e2   : > { %v1280_v1 = vmul.f32 0.00024414063, %v1247_v9  ;;  %v1252_v33 = vrot.slane %v1251_v7, 1  ;;  %v1256_v19 = vrot.slane %v1255_v35, 2  ;;  %v1260_v20 = vrot.slane %v1219_v39, 4 }
 0x1e3   : > { %v1351_v21 = vadd.f32 %v1350_v13, %v1320_v28  ;;  %v1322_v38 = vmul.f32 %v2436_v11, %v2436_v11  ;;  %v1323_v44 = vmul.f32 %v2441_v17, %v2441_v17  ;;  %v1324_v46 = vmul.f32 %v2444_v32, %v2444_v32 }
 0x1e4   : > { %v1253_v45 = vadd.f32 %v1252_v33, %v1251_v7  ;;  %v1257_v34 = vadd.f32 %v1256_v19, %v1255_v35  ;;  %v1261_v47 = vadd.f32 %v1260_v20, %v1219_v39  ;;  %v2456_v54 = vsub.f32 %v2327_v41, %v1280_v1 }
 0x1e5   : > { %v1224_v22 = vpop.xlane.xlu0 %1223  ;;  %v1352_v23 = vadd.f32 %v1351_v21, %v1321_v12  ;;  %v1355_v24 = vadd.f32 %v1323_v44, %v1322_v38  ;;  %v2459_v52 = vsub.f32 %v2329_v42, %v1280_v1  ;;  %v1325_v2 = vmul.f32 %v2447_v43, %v2447_v43 }
 0x1e6   : > { %v1281_v55 = vmul.f32 0.00024414063, %v1253_v45  ;;  %v1258_v56 = vrot.slane %v1257_v34, 1  ;;  %v1262_v62 = vrot.slane %v1261_v47, 2  ;;  %v1266_v30 = vrot.slane %v1224_v22, 4 }
 0x1e7   : > { %1353 = vadd.xlane.f32.xlu0 %v1352_v23  ;;  %v1356_v3 = vadd.f32 %v1355_v24, %v1324_v46  ;;  %v2464_v6 = vsub.f32 %v2345_v60, %v1280_v1  ;;  %v1326_v8 = vmul.f32 %v2456_v54, %v2456_v54  ;;  %v1327_v42 = vmul.f32 %v2459_v52, %v2459_v52 }
 0x1e8   : > { %v1259_v41 = vadd.f32 %v1258_v56, %v1257_v34  ;;  %v1263_v31 = vadd.f32 %v1262_v62, %v1261_v47  ;;  %v1267_v28 = vadd.f32 %v1266_v30, %v1224_v22  ;;  %v2471_v35 = vsub.f32 %v2348_v48, %v1280_v1 }
 0x1e9   : > { %v1229_v9 = vpop.xlane.xlu1 %1228  ;;  %v1357_v7 = vadd.f32 %v1356_v3, %v1325_v2  ;;  %v1328_v39 = vmul.f32 %v2464_v6, %v2464_v6  ;;  %v2476_v60 = vsub.f32 %v2341_v57, %v1281_v55  ;;  %v1360_v20 = vadd.f32 %v1327_v42, %v1326_v8 }
 0x1ea   : > { %v1282_v12 = vmul.f32 0.00024414063, %v1259_v41  ;;  %v1264_v13 = vrot.slane %v1263_v31, 1  ;;  %v1268_v33 = vrot.slane %v1267_v28, 2  ;;  %v1272_v19 = vrot.slane %v1229_v9, 4 }
 0x1eb   : > { %1358 = vadd.xlane.f32.xlu1 %v1357_v7  ;;  %v2479_v21 = vsub.f32 %v2343_v59, %v1281_v55  ;;  %v2482_v38 = vsub.f32 %v2357_v5, %v1281_v55  ;;  %v2485_v48 = vsub.f32 %v2361_v10, %v1281_v55  ;;  %v1330_v57 = vmul.f32 %v2476_v60, %v2476_v60 }
 0x1ec   : > { %v1265_v1 = vadd.f32 %v1264_v13, %v1263_v31  ;;  %v1269_v44 = vadd.f32 %v1268_v33, %v1267_v28  ;;  %v1273_v45 = vadd.f32 %v1272_v19, %v1229_v9  ;;  %v1329_v34 = vmul.f32 %v2471_v35, %v2471_v35 }
 0x1ed   : > { %v1361_v47 = vadd.f32 %v1360_v20, %v1328_v39  ;;  %v1331_v59 = vmul.f32 %v2479_v21, %v2479_v21  ;;  %v1332_v5 = vmul.f32 %v2482_v38, %v2482_v38  ;;  %v2496_v23 = vsub.f32 %v2351_v58, %v1282_v12 }
 0x1ee   : > { %v1283_v46 = vmul.f32 0.00024414063, %v1265_v1  ;;  %v1270_v22 = vrot.slane %v1269_v44, 1  ;;  %v1274_v10 = vrot.slane %v1273_v45, 2  ;;  %v2499_v56 = vsub.f32 %v2353_v63, %v1282_v12 }
 0x1ef   : > { %v1362_v24 = vadd.f32 %v1361_v47, %v1329_v34  ;;  %v1365_v55 = vadd.f32 %v1331_v59, %v1330_v57  ;;  %v2502_v62 = vsub.f32 %v2370_v16, %v1282_v12  ;;  %v1333_v3 = vmul.f32 %v2485_v48, %v2485_v48 }
 0x1f0   : > { %v1271_v30 = vadd.f32 %v1270_v22, %v1269_v44  ;;  %v1275_v2 = vadd.f32 %v1274_v10, %v1273_v45  ;;  %v1334_v8 = vmul.f32 %v2496_v23, %v2496_v23  ;;  %v2509_v58 = vsub.f32 %v2374_v36, %v1282_v12 }
 0x1f1   : > { %1363 = vadd.xlane.f32.xlu0 %v1362_v24  ;;  %v1366_v41 = vadd.f32 %v1365_v55, %v1332_v5  ;;  %v1335_v63 = vmul.f32 %v2499_v56, %v2499_v56  ;;  %v2514_v31 = vsub.f32 %v2366_v14, %v1283_v46  ;;  %v1336_v42 = vmul.f32 %v2502_v62, %v2502_v62 }
 0x1f2   : > { %v1284_v16 = vmul.f32 0.00024414063, %v1271_v30  ;;  %v1276_v28 = vrot.slane %v1275_v2, 1  ;;  %v2519_v9 = vsub.f32 %v2368_v15, %v1283_v46  ;;  %v2522_v13 = vsub.f32 %v2386_v40, %v1283_v46 }
 0x1f3   : > { %v1367_v7 = vadd.f32 %v1366_v41, %v1333_v3  ;;  %v1370_v39 = vadd.f32 %v1335_v63, %v1334_v8  ;;  %v2525_v36 = vsub.f32 %v2390_v49, %v1283_v46  ;;  %v1338_v14 = vmul.f32 %v2514_v31, %v2514_v31 }
 0x1f4   : > { %v1277_v12 = vadd.f32 %v1276_v28, %v1275_v2  ;;  %v1339_v33 = vmul.f32 %v2519_v9, %v2519_v9  ;;  %v2532_v19 = vsub.f32 %v2378_v37, %v1284_v16  ;;  %v1337_v15 = vmul.f32 %v2509_v58, %v2509_v58 }
 0x1f5   : > { %1368 = vadd.xlane.f32.xlu1 %v1367_v7  ;;  %v1371_v20 = vadd.f32 %v1370_v39, %v1336_v42  ;;  %v2537_v40 = vsub.f32 %v2382_v18, %v1284_v16  ;;  %v1340_v1 = vmul.f32 %v2522_v13, %v2522_v13  ;;  %v2542_v45 = vsub.f32 %v2402_v51, %v1284_v16 }
 0x1f6   : > { %v1285_v49 = vmul.f32 0.00024414063, %v1277_v12  ;;  %v1375_v44 = vadd.f32 %v1339_v33, %v1338_v14  ;;  %v2545_v37 = vsub.f32 %v2406_v0, %v1284_v16  ;;  %v1342_v34 = vmul.f32 %v2532_v19, %v2532_v19 }
 0x1f7   : > { %v1372_v57 = vadd.f32 %v1371_v20, %v1337_v15  ;;  %v1343_v47 = vmul.f32 %v2537_v40, %v2537_v40  ;;  %v1341_v18 = vmul.f32 %v2525_v36, %v2525_v36  ;;  %v1344_v51 = vmul.f32 %v2542_v45, %v2542_v45 }
 0x1f8   : > { %v1376_v59 = vadd.f32 %v1375_v44, %v1340_v1  ;;  %v2554_v5 = vsub.f32 %v2396_v25, %v1285_v49  ;;  %v2559_v0 = vsub.f32 %v2400_v50, %v1285_v49  ;;  %v2562_v22 = vsub.f32 %v2410_v27, %v1285_v49 }
 0x1f9   : > { %1373 = vadd.xlane.f32.xlu0 %v1372_v57  ;;  %v1380_v46 = vadd.f32 %v1343_v47, %v1342_v34  ;;  %v1345_v55 = vmul.f32 %v2545_v37, %v2545_v37  ;;  %v2569_v30 = vsub.f32 %v2414_v4, %v1285_v49 }
 0x1fa   : > { %v1377_v10 = vadd.f32 %v1376_v59, %v1341_v18  ;;  %v1346_v24 = vmul.f32 %v2554_v5, %v2554_v5  ;;  %v1347_v2 = vmul.f32 %v2559_v0, %v2559_v0  ;;  %v1348_v27 = vmul.f32 %v2562_v22, %v2562_v22 }
 0x1fb   : > { %v1381_v25 = vadd.f32 %v1380_v46, %v1344_v51  ;;  %v1349_v8 = vmul.f32 %v2569_v30, %v2569_v30 }
 0x1fc   : > { %1378 = vadd.xlane.f32.xlu1 %v1377_v10  ;;  %v1385_v3 = vadd.f32 %v1347_v2, %v1346_v24 }
 0x1fd   : > { %v1382_v50 = vadd.f32 %v1381_v25, %v1345_v55 }
 0x1fe   : > { %v1386_v41 = vadd.f32 %v1385_v3, %v1348_v27 }
 0x1ff   : > { %1383 = vadd.xlane.f32.xlu0 %v1382_v50 }
 0x200   : > { %v1387_v63 = vadd.f32 %v1386_v41, %v1349_v8 }
 0x202   : > { %1388 = vadd.xlane.f32.xlu1 %v1387_v63 }
 0x270   : > { %v1354_v16 = vpop.xlane.xlu0 %1353 }
 0x271   : > { %v1390_v28 = vrot.slane %v1354_v16, 4 }
 0x273   : > { %v1391_v4 = vadd.f32 %v1390_v28, %v1354_v16 }
 0x274   : > { %v1359_v42 = vpop.xlane.xlu1 %1358 }
 0x275   : > { %v1392_v7 = vrot.slane %v1391_v4, 2  ;;  %v1396_v39 = vrot.slane %v1359_v42, 4 }
 0x277   : > { %v1393_v12 = vadd.f32 %v1392_v7, %v1391_v4  ;;  %v1397_v14 = vadd.f32 %v1396_v39, %v1359_v42 }
 0x279   : > { %v1394_v33 = vrot.slane %v1393_v12, 1  ;;  %v1398_v15 = vrot.slane %v1397_v14, 2 }
 0x27a   : > { %v1364_v20 = vpop.xlane.xlu0 %1363 }
 0x27b   : > { %v1395_v49 = vadd.f32 %v1394_v33, %v1393_v12  ;;  %v1399_v1 = vadd.f32 %v1398_v15, %v1397_v14  ;;  %v1402_v44 = vrot.slane %v1364_v20, 4 }
 0x27d   : > { %v1438_v57 = vmul.f32 0.00024414063, %v1395_v49  ;;  %v1400_v34 = vrot.slane %v1399_v1, 1  ;;  %v1403_v47 = vadd.f32 %v1402_v44, %v1364_v20 }
 0x27e   : > { %v1369_v18 = vpop.xlane.xlu1 %1368 }
 0x27f   : > { %v1446_v59 = vadd.f32 1e-05, %v1438_v57  ;;  %v1401_v51 = vadd.f32 %v1400_v34, %v1399_v1  ;;  %v1404_v46 = vrot.slane %v1403_v47, 2  ;;  %v1408_v10 = vrot.slane %v1369_v18, 4 }
 0x281   : > { %2015 = vrsqrt.f32 %v1446_v59  ;;  %v1439_v24 = vmul.f32 0.00024414063, %v1401_v51  ;;  %v1405_v55 = vadd.f32 %v1404_v46, %v1403_v47  ;;  %v1409_v25 = vadd.f32 %v1408_v10, %v1369_v18 }
 0x282   : > { %v1374_v2 = vpop.xlane.xlu0 %1373 }
 0x283   : > { %v1447_v50 = vadd.f32 1e-05, %v1439_v24  ;;  %v1406_v27 = vrot.slane %v1405_v55, 1  ;;  %v1410_v3 = vrot.slane %v1409_v25, 2  ;;  %v1414_v8 = vrot.slane %v1374_v2, 4 }
 0x285   : > { %2017 = vrsqrt.f32 %v1447_v50  ;;  %v1407_v41 = vadd.f32 %v1406_v27, %v1405_v55  ;;  %v1411_v63 = vadd.f32 %v1410_v3, %v1409_v25  ;;  %v1415_v16 = vadd.f32 %v1414_v8, %v1374_v2  ;;  %v1379_v28 = vpop.xlane.xlu1 %1378 }
 0x286   : > { %v1420_v4 = vrot.slane %v1379_v28, 4 }
 0x287   : > { %v1440_v42 = vmul.f32 0.00024414063, %v1407_v41  ;;  %v1412_v7 = vrot.slane %v1411_v63, 1  ;;  %v1416_v39 = vrot.slane %v1415_v16, 2 }
 0x288   : > { %v1421_v12 = vadd.f32 %v1420_v4, %v1379_v28  ;;  %v1384_v14 = vpop.xlane.xlu0 %1383 }
 0x289   : > { %v1448_v33 = vadd.f32 1e-05, %v1440_v42  ;;  %v1413_v15 = vadd.f32 %v1412_v7, %v1411_v63  ;;  %v1417_v20 = vadd.f32 %v1416_v39, %v1415_v16  ;;  %v1426_v49 = vrot.slane %v1384_v14, 4 }
 0x28a   : > { %v1422_v1 = vrot.slane %v1421_v12, 2 }
 0x28b   : > { %2019 = vrsqrt.f32 %v1448_v33  ;;  %v1441_v44 = vmul.f32 0.00024414063, %v1413_v15  ;;  %v1418_v57 = vrot.slane %v1417_v20, 1  ;;  %v1427_v34 = vadd.f32 %v1426_v49, %v1384_v14  ;;  %v1389_v51 = vpop.xlane.xlu1 %1388 }
 0x28c   : > { %v1423_v47 = vadd.f32 %v1422_v1, %v1421_v12  ;;  %v1432_v8 = vrot.slane %v1389_v51, 4 }
 0x28d   : > { %v1449_v18 = vadd.f32 1e-05, %v1441_v44  ;;  %v1419_v59 = vadd.f32 %v1418_v57, %v1417_v20  ;;  %v1428_v24 = vrot.slane %v1427_v34, 2 }
 0x28e   : > { %v2016_v46 = vpop.eup %2015  ;;  %v1424_v10 = vrot.slane %v1423_v47, 1 }
 0x28f   : > { %v1462_v55 = vmul.f32 %v2016_v46, %v2418_v61  ;;  %v1463_v25 = vmul.f32 %v2016_v46, %v2421_v53  ;;  %v1464_v2 = vmul.f32 %v2016_v46, %v2424_v26  ;;  %v1465_v50 = vmul.f32 %v2016_v46, %v2427_v29 }
 0x290   : > { %2021 = vrsqrt.f32 %v1449_v18  ;;  %v1442_v27 = vmul.f32 0.00024414063, %v1419_v59  ;;  %v1425_v3 = vadd.f32 %v1424_v10, %v1423_v47  ;;  %v1429_v29 = vadd.f32 %v1428_v24, %v1427_v34 }
 0x291   : > { %vm1494_vm1 = vcmp.ge.f32.partialorder %v1462_v55, 0.0  ;;  %vm1495_vm2 = vcmp.ge.f32.partialorder %v1463_v25, 0.0  ;;  %vm1496_vm3 = vcmp.ge.f32.partialorder %v1464_v2, 0.0  ;;  %vm1497_vm4 = vcmp.ge.f32.partialorder %v1465_v50, 0.0 }
 0x292   : > { %v2018_v41 = vpop.eup %2017  ;;  %v1526_v61 = vmul.f32 0.1, %v1462_v55  ;;  %v1527_v53 = vmul.f32 0.1, %v1463_v25  ;;  %v1528_v26 = vmul.f32 0.1, %v1464_v2 }
 0x293   : > { %v1529_v63 = vmul.f32 0.1, %v1465_v50  ;;  %v1466_v16 = vmul.f32 %v2018_v41, %v2436_v11  ;;  %v1467_v28 = vmul.f32 %v2018_v41, %v2441_v17  ;;  %v1468_v4 = vmul.f32 %v2018_v41, %v2444_v32 }
 0x294   : > { %v1558_v42 = vsel %vm1494_vm1, %v1462_v55, %v1526_v61  ;;  %v1559_v7 = vsel %vm1495_vm2, %v1463_v25, %v1527_v53  ;;  %v1560_v39 = vsel %vm1496_vm3, %v1464_v2, %v1528_v26  ;;  %v1469_v12 = vmul.f32 %v2018_v41, %v2447_v43 }
 0x295   : > { %v1561_v14 = vsel %vm1497_vm4, %v1465_v50, %v1529_v63  ;;  %1590 = vst [vmem:[%s2585_s10] sm:$0xff] %v1558_v42  ;;  %1591 = vst [vmem:[%s2585_s10 + $0x8] sm:$0xff] %v1559_v7  ;;  %vm1498_vm5 = vcmp.ge.f32.partialorder %v1466_v16, 0.0  ;;  %vm1499_vm6 = vcmp.ge.f32.partialorder %v1467_v28, 0.0  ;;  %vm1500_vm7 = vcmp.ge.f32.partialorder %v1468_v4, 0.0 }
 0x296   : > { %1592 = vst [vmem:[%s2585_s10 + $0x10] sm:$0xff] %v1560_v39  ;;  %1593 = vst [vmem:[%s2585_s10 + $0x18] sm:$0xff] %v1561_v14  ;;  %vm1501_vm8 = vcmp.ge.f32.partialorder %v1469_v12, 0.0  ;;  %v1530_v11 = vmul.f32 0.1, %v1466_v16  ;;  %v1443_v33 = vmul.f32 0.00024414063, %v1425_v3  ;;  %v1433_v43 = vadd.f32 %v1432_v8, %v1389_v51 }
 0x297   : > { %v1531_v17 = vmul.f32 0.1, %v1467_v28  ;;  %v1532_v32 = vmul.f32 0.1, %v1468_v4  ;;  %v1533_v15 = vmul.f32 0.1, %v1469_v12 }
 0x298   : > { %v1450_v20 = vadd.f32 1e-05, %v1442_v27  ;;  %v2020_v49 = vpop.eup %2019  ;;  %v1562_v1 = vsel %vm1498_vm5, %v1466_v16, %v1530_v11  ;;  %v1451_v57 = vadd.f32 1e-05, %v1443_v33  ;;  %v1430_v34 = vrot.slane %v1429_v29, 1 }
 0x299   : > { %v1563_v44 = vsel %vm1499_vm6, %v1467_v28, %v1531_v17  ;;  %v1564_v47 = vsel %vm1500_vm7, %v1468_v4, %v1532_v32  ;;  %v1565_v18 = vsel %vm1501_vm8, %v1469_v12, %v1533_v15  ;;  %1594 = vst [vmem:[%s2585_s10 + $0x20] sm:$0xff] %v1562_v1  ;;  %v1470_v59 = vmul.f32 %v2020_v49, %v2456_v54 }
 0x29a   : > { %1595 = vst [vmem:[%s2585_s10 + $0x28] sm:$0xff] %v1563_v44  ;;  %v1471_v46 = vmul.f32 %v2020_v49, %v2459_v52  ;;  %1596 = vst [vmem:[%s2585_s10 + $0x30] sm:$0xff] %v1564_v47  ;;  %v1472_v10 = vmul.f32 %v2020_v49, %v2464_v6  ;;  %v1473_v24 = vmul.f32 %v2020_v49, %v2471_v35  ;;  %2023 = vrsqrt.f32 %v1450_v20 }
 0x29b   : > { %1597 = vst [vmem:[%s2585_s10 + $0x38] sm:$0xff] %v1565_v18  ;;  %v1431_v51 = vadd.f32 %v1430_v34, %v1429_v29  ;;  %vm1502_vm9 = vcmp.ge.f32.partialorder %v1470_v59, 0.0  ;;  %v1534_v55 = vmul.f32 0.1, %v1470_v59  ;;  %2025 = vrsqrt.f32 %v1451_v57 }
 0x29c   : > { %vm1503_vm10 = vcmp.ge.f32.partialorder %v1471_v46, 0.0  ;;  %v1535_v25 = vmul.f32 0.1, %v1471_v46  ;;  %vm1504_vm11 = vcmp.ge.f32.partialorder %v1472_v10, 0.0  ;;  %vm1505_vm12 = vcmp.ge.f32.partialorder %v1473_v24, 0.0 }
 0x29d   : > { %v1536_v54 = vmul.f32 0.1, %v1472_v10  ;;  %v1537_v52 = vmul.f32 0.1, %v1473_v24  ;;  %v2022_v2 = vpop.eup %2021  ;;  %v1566_v50 = vsel %vm1502_vm9, %v1470_v59, %v1534_v55  ;;  %v1444_v6 = vmul.f32 0.00024414063, %v1431_v51 }
 0x29e   : > { %v1567_v27 = vsel %vm1503_vm10, %v1471_v46, %v1535_v25  ;;  %1598 = vst [vmem:[%s2585_s10 + $0x40] sm:$0xff] %v1566_v50  ;;  %v1474_v8 = vmul.f32 %v2022_v2, %v2476_v60  ;;  %v1475_v41 = vmul.f32 %v2022_v2, %v2479_v21  ;;  %v1476_v61 = vmul.f32 %v2022_v2, %v2482_v38 }
 0x29f   : > { %v1568_v35 = vsel %vm1504_vm11, %v1472_v10, %v1536_v54  ;;  %v1569_v3 = vsel %vm1505_vm12, %v1473_v24, %v1537_v52  ;;  %1599 = vst [vmem:[%s2585_s10 + $0x48] sm:$0xff] %v1567_v27  ;;  %v1477_v53 = vmul.f32 %v2022_v2, %v2485_v48  ;;  %v1452_v26 = vadd.f32 1e-05, %v1444_v6 }
 0x2a0   : > { %1600 = vst [vmem:[%s2585_s10 + $0x50] sm:$0xff] %v1568_v35  ;;  %1601 = vst [vmem:[%s2585_s10 + $0x58] sm:$0xff] %v1569_v3  ;;  %v1434_v29 = vrot.slane %v1433_v43, 2  ;;  %vm1506_vm13 = vcmp.ge.f32.partialorder %v1474_v8, 0.0  ;;  %vm1507_vm14 = vcmp.ge.f32.partialorder %v1475_v41, 0.0  ;;  %vm1508_vm15 = vcmp.ge.f32.partialorder %v1476_v61, 0.0 }
 0x2a1   : > { %v1538_v63 = vmul.f32 0.1, %v1474_v8  ;;  %v1539_v16 = vmul.f32 0.1, %v1475_v41  ;;  %vm1509_vm0 = vcmp.ge.f32.partialorder %v1477_v53, 0.0  ;;  %2027 = vrsqrt.f32 %v1452_v26 }
 0x2a2   : > { %v1540_v60 = vmul.f32 0.1, %v1476_v61  ;;  %v1541_v21 = vmul.f32 0.1, %v1477_v53  ;;  %v1435_v38 = vadd.f32 %v1434_v29, %v1433_v43 }
 0x2a3   : > { %v1570_v28 = vsel %vm1506_vm13, %v1474_v8, %v1538_v63  ;;  %v1571_v4 = vsel %vm1507_vm14, %v1475_v41, %v1539_v16 }
 0x2a4   : > { %v1572_v42 = vsel %vm1508_vm15, %v1476_v61, %v1540_v60  ;;  %v1573_v48 = vsel %vm1509_vm0, %v1477_v53, %v1541_v21  ;;  %1602 = vst [vmem:[%s2585_s10 + $0x60] sm:$0xff] %v1570_v28  ;;  %1603 = vst [vmem:[%s2585_s10 + $0x68] sm:$0xff] %v1571_v4  ;;  %v1436_v7 = vrot.slane %v1435_v38, 1 }
 0x2a5   : > { %1604 = vst [vmem:[%s2585_s10 + $0x70] sm:$0xff] %v1572_v42  ;;  %1605 = vst [vmem:[%s2585_s10 + $0x78] sm:$0xff] %v1573_v48 }
 0x2a6   : > { %v1437_v39 = vadd.f32 %v1436_v7, %v1435_v38 }
 0x2a7   : > { %v2024_v12 = vpop.eup %2023 }
 0x2a8   : > { %v1478_v14 = vmul.f32 %v2024_v12, %v2496_v23  ;;  %v1479_v11 = vmul.f32 %v2024_v12, %v2499_v56  ;;  %v1480_v17 = vmul.f32 %v2024_v12, %v2502_v62  ;;  %v1481_v33 = vmul.f32 %v2024_v12, %v2509_v58  ;;  %v2026_v15 = vpop.eup %2025 }
 0x2a9   : > { %v1445_v32 = vmul.f32 0.00024414063, %v1437_v39  ;;  %v1482_v23 = vmul.f32 %v2026_v15, %v2514_v31  ;;  %v1483_v56 = vmul.f32 %v2026_v15, %v2519_v9  ;;  %v1484_v62 = vmul.f32 %v2026_v15, %v2522_v13 }
 0x2aa   : > { %vm1510_vm1 = vcmp.ge.f32.partialorder %v1478_v14, 0.0  ;;  %vm1511_vm2 = vcmp.ge.f32.partialorder %v1479_v11, 0.0  ;;  %vm1512_vm3 = vcmp.ge.f32.partialorder %v1480_v17, 0.0  ;;  %vm1513_vm4 = vcmp.ge.f32.partialorder %v1481_v33, 0.0 }
 0x2ab   : > { %v1542_v20 = vmul.f32 0.1, %v1478_v14  ;;  %v1543_v43 = vmul.f32 0.1, %v1479_v11  ;;  %v1544_v49 = vmul.f32 0.1, %v1480_v17  ;;  %v1485_v58 = vmul.f32 %v2026_v15, %v2525_v36 }
 0x2ac   : > { %v1545_v1 = vmul.f32 0.1, %v1481_v33  ;;  %vm1514_vm5 = vcmp.ge.f32.partialorder %v1482_v23, 0.0  ;;  %vm1515_vm6 = vcmp.ge.f32.partialorder %v1483_v56, 0.0  ;;  %vm1516_vm7 = vcmp.ge.f32.partialorder %v1484_v62, 0.0 }
 0x2ad   : > { %v1574_v44 = vsel %vm1510_vm1, %v1478_v14, %v1542_v20  ;;  %v1575_v57 = vsel %vm1511_vm2, %v1479_v11, %v1543_v43  ;;  %v1576_v34 = vsel %vm1512_vm3, %v1480_v17, %v1544_v49  ;;  %vm1517_vm8 = vcmp.ge.f32.partialorder %v1485_v58, 0.0 }
 0x2ae   : > { %v1577_v47 = vsel %vm1513_vm4, %v1481_v33, %v1545_v1  ;;  %1606 = vst [vmem:[%s2585_s10 + $0x80] sm:$0xff] %v1574_v44  ;;  %1607 = vst [vmem:[%s2585_s10 + $0x88] sm:$0xff] %v1575_v57  ;;  %v2028_v31 = vpop.eup %2027  ;;  %v1546_v9 = vmul.f32 0.1, %v1482_v23  ;;  %v1547_v13 = vmul.f32 0.1, %v1483_v56 }
 0x2af   : > { %1608 = vst [vmem:[%s2585_s10 + $0x90] sm:$0xff] %v1576_v34  ;;  %1609 = vst [vmem:[%s2585_s10 + $0x98] sm:$0xff] %v1577_v47  ;;  %v1548_v36 = vmul.f32 0.1, %v1484_v62  ;;  %v1549_v18 = vmul.f32 0.1, %v1485_v58  ;;  %v1486_v59 = vmul.f32 %v2028_v31, %v2532_v19  ;;  %v1487_v46 = vmul.f32 %v2028_v31, %v2537_v40 }
 0x2b0   : > { %v1488_v10 = vmul.f32 %v2028_v31, %v2542_v45  ;;  %v1578_v24 = vsel %vm1514_vm5, %v1482_v23, %v1546_v9  ;;  %v1579_v51 = vsel %vm1515_vm6, %v1483_v56, %v1547_v13  ;;  %v1489_v25 = vmul.f32 %v2028_v31, %v2545_v37 }
 0x2b1   : > { %v1580_v55 = vsel %vm1516_vm7, %v1484_v62, %v1548_v36  ;;  %v1581_v54 = vsel %vm1517_vm8, %v1485_v58, %v1549_v18  ;;  %1610 = vst [vmem:[%s2585_s10 + $0xa0] sm:$0xff] %v1578_v24  ;;  %1611 = vst [vmem:[%s2585_s10 + $0xa8] sm:$0xff] %v1579_v51  ;;  %vm1518_vm9 = vcmp.ge.f32.partialorder %v1486_v59, 0.0  ;;  %vm1519_vm10 = vcmp.ge.f32.partialorder %v1487_v46, 0.0 }
 0x2b2   : > { %1612 = vst [vmem:[%s2585_s10 + $0xb0] sm:$0xff] %v1580_v55  ;;  %1613 = vst [vmem:[%s2585_s10 + $0xb8] sm:$0xff] %v1581_v54  ;;  %vm1520_vm11 = vcmp.ge.f32.partialorder %v1488_v10, 0.0  ;;  %vm1521_vm12 = vcmp.ge.f32.partialorder %v1489_v25, 0.0  ;;  %v1550_v19 = vmul.f32 0.1, %v1486_v59 }
 0x2b3   : > { %v1551_v40 = vmul.f32 0.1, %v1487_v46  ;;  %v1552_v45 = vmul.f32 0.1, %v1488_v10  ;;  %v1553_v52 = vmul.f32 0.1, %v1489_v25 }
 0x2b4   : > { %v1453_v2 = vadd.f32 1e-05, %v1445_v32  ;;  %v1582_v50 = vsel %vm1518_vm9, %v1486_v59, %v1550_v19 }
 0x2b5   : > { %v1583_v37 = vsel %vm1519_vm10, %v1487_v46, %v1551_v40  ;;  %v1584_v27 = vsel %vm1520_vm11, %v1488_v10, %v1552_v45  ;;  %v1585_v6 = vsel %vm1521_vm12, %v1489_v25, %v1553_v52  ;;  %1614 = vst [vmem:[%s2585_s10 + $0xc0] sm:$0xff] %v1582_v50 }
 0x2b6   : > { %1615 = vst [vmem:[%s2585_s10 + $0xc8] sm:$0xff] %v1583_v37  ;;  %2029 = vrsqrt.f32 %v1453_v2  ;;  %1616 = vst [vmem:[%s2585_s10 + $0xd0] sm:$0xff] %v1584_v27 }
 0x2b7   : > { %1617 = vst [vmem:[%s2585_s10 + $0xd8] sm:$0xff] %v1585_v6 }
 0x2c3   : > { %v2030_v35 = vpop.eup %2029 }
 0x2c4   : > { %v1490_v3 = vmul.f32 %v2030_v35, %v2554_v5  ;;  %v1491_v8 = vmul.f32 %v2030_v35, %v2559_v0  ;;  %v1492_v41 = vmul.f32 %v2030_v35, %v2562_v22  ;;  %v1493_v61 = vmul.f32 %v2030_v35, %v2569_v30 }
 0x2c6   : > { %vm1522_vm13 = vcmp.ge.f32.partialorder %v1490_v3, 0.0  ;;  %vm1523_vm14 = vcmp.ge.f32.partialorder %v1491_v8, 0.0  ;;  %vm1524_vm15 = vcmp.ge.f32.partialorder %v1492_v41, 0.0  ;;  %vm1525_vm0 = vcmp.ge.f32.partialorder %v1493_v61, 0.0 }
 0x2c7   : > { %v1554_v53 = vmul.f32 0.1, %v1490_v3  ;;  %v1555_v26 = vmul.f32 0.1, %v1491_v8  ;;  %v1556_v29 = vmul.f32 0.1, %v1492_v41 }
 0x2c8   : > { %v1557_v63 = vmul.f32 0.1, %v1493_v61 }
 0x2c9   : > { %v1586_v16 = vsel %vm1522_vm13, %v1490_v3, %v1554_v53  ;;  %v1587_v5 = vsel %vm1523_vm14, %v1491_v8, %v1555_v26  ;;  %v1588_v60 = vsel %vm1524_vm15, %v1492_v41, %v1556_v29 }
 0x2ca   : > { %v1589_v21 = vsel %vm1525_vm0, %v1493_v61, %v1557_v63  ;;  %1618 = vst [vmem:[%s2585_s10 + $0xe0] sm:$0xff] %v1586_v16  ;;  %1619 = vst [vmem:[%s2585_s10 + $0xe8] sm:$0xff] %v1587_v5 }
 0x2cb   : > { %1620 = vst [vmem:[%s2585_s10 + $0xf0] sm:$0xff] %v1588_v60  ;;  %1621 = vst [vmem:[%s2585_s10 + $0xf8] sm:$0xff] %v1589_v21 }
 0x2cc PF: > { %s12_s9 = sadd.s32 1, %s2037_s9  }
 0x2cd   : > { %p9_p4 = scmp.ge.s32.totalorder %s12_s9, 4  }
 0x2cf   :  { %11 = sbr.rel (!%p9_p4) target bundleno = 1 (0x1), region = 58 }

</bundles_post_ra>
